<compile_context>
chip_gen: v5e
topology: v5e:2x2
jax: 0.10.0
libtpu: 0.0.40
codegen_flags: <defaults>
</compile_context>

<pallas_src>
import jax
import jax.numpy as jnp
from jax import lax
from jax.experimental import pallas as pl
from jax.experimental.pallas import tpu as pltpu

MARGIN = 1.0
_EPS = 1e-16
_BIG = 1e30


def _triplet_block_kernel(f_ref, fa_ref, sqn_row_ref, sqn_blk_ref,
                          lab_row_ref, lab_blk_ref, lab_col_ref, lab_acol_ref,
                          out_sum_ref, out_cnt_ref):
    blk = pl.program_id(0)

    f = f_ref[...]                                    # (B, D)  f32   all samples
    fa = fa_ref[...]                                  # (TA, D) f32   this block's anchors
    sqn_row = sqn_row_ref[...]                        # (1, B)  f32   ||x_k||^2 along lanes
    lab_row = lab_row_ref[...]                        # (1, B)  i32   labels along lanes
    lab_col = lab_col_ref[...]                        # (B, 1)  i32   labels along sublanes
    lab_acol = lab_acol_ref[...]                      # (TA, 1) i32   anchor labels (col)
    B = f.shape[0]
    TA = fa.shape[0]
    sqn_a_row = sqn_blk_ref[...].reshape(1, TA)       # (1, TA) f32   anchor ||x||^2 (row)
    lab_a_row = lab_blk_ref[...].reshape(1, TA)       # (1, TA) i32   anchor labels (row)

    # --- distances between this anchor block and every sample (both orientations) ---
    sqn_col = jnp.sum(f * f, axis=1, keepdims=True)        # (B, 1)
    sqn_a_col = jnp.sum(fa * fa, axis=1, keepdims=True)    # (TA, 1)

    gram_ba = lax.dot_general(f, fa, (((1,), (1,)), ((), ())),
                              preferred_element_type=jnp.float32)   # (B, TA)
    gram_ab = lax.dot_general(fa, f, (((1,), (1,)), ((), ())),
                              preferred_element_type=jnp.float32)   # (TA, B)

    d2_ba = jnp.maximum(sqn_col + sqn_a_row - 2.0 * gram_ba, 0.0)   # d^2(j, anchor a)
    d2_ab = jnp.maximum(sqn_a_col + sqn_row - 2.0 * gram_ab, 0.0)   # d^2(anchor a, k)

    # squared=False path: sqrt with the zero-distance guard used by the reference.
    z_ba = (d2_ba == 0.0).astype(jnp.float32)
    dist_ba = jnp.sqrt(d2_ba + z_ba * _EPS) * (1.0 - z_ba)          # (B, TA)
    z_ab = (d2_ab == 0.0).astype(jnp.float32)
    dist_ab = jnp.sqrt(d2_ab + z_ab * _EPS) * (1.0 - z_ab)          # (TA, B)

    # --- masks, built in-kernel and folded into the distances (hoisted out of loop) ---
    j_idx = lax.broadcasted_iota(jnp.int32, (B, TA), 0)
    a_idx = blk * TA + lax.broadcasted_iota(jnp.int32, (B, TA), 1)
    # positive over j: label[j] == label[a] and j != a
    pos_ba = (lab_col == lab_a_row) & (j_idx != a_idx)              # (B, TA) bool
    # negative over k: label[k] != label[a]  (implies k != a and j != k when paired with pos)
    neg_ab = (lab_acol != lab_row)                                  # (TA, B) bool

    dist_p = jnp.where(pos_ba, dist_ba, -_BIG)                      # (B, TA)
    dist_n = jnp.where(neg_ab, dist_ab, _BIG)                       # (TA, B)

    # --- batch-all triplet hinge: short static unroll over the TA anchors of this block ---
    sum_row = jnp.zeros((1, B), jnp.float32)
    cnt_row = jnp.zeros((1, B), jnp.float32)
    for a in range(TA):
        ap_col = dist_p[:, a:a + 1]                                 # (B, 1) d(anchor, pos j)
        an_row = dist_n[a:a + 1, :]                                 # (1, B) d(anchor, neg k)
        hinge = jnp.maximum(ap_col - an_row + MARGIN, 0.0)          # (B, B) masked hinge
        sum_row = sum_row + jnp.sum(hinge, axis=0, keepdims=True)
        cnt_row = cnt_row + jnp.sum((hinge > _EPS).astype(jnp.float32),
                                    axis=0, keepdims=True)

    out_sum_ref[...] = sum_row.reshape(1, 1, B)
    out_cnt_ref[...] = cnt_row.reshape(1, 1, B)


def exp_triplet_loss(feats, labels, *, anchor_block=8):
    """ExpTripletLoss.forward with use_hardest=False (batch-all triplet loss)."""
    B, D = feats.shape
    feats = feats.astype(jnp.float32)
    labels = labels.astype(jnp.int32)

    TA = min(anchor_block, B)
    assert B % TA == 0 and (TA % 8 == 0 or TA == B), (B, TA)
    NB = B // TA

    # Tiny glue arrays (O(B) bytes): squared norms + labels in both orientations.
    sqn = jnp.sum(feats * feats, axis=1)              # (B,)
    sqn_row = sqn[None, :]                            # (1, B)
    sqn_blk = sqn.reshape(NB, 1, TA)                  # (NB, 1, TA)
    lab_row = labels[None, :]                         # (1, B)
    lab_blk = labels.reshape(NB, 1, TA)               # (NB, 1, TA)
    lab_col = labels[:, None]                         # (B, 1)

    grid_spec = pltpu.PrefetchScalarGridSpec(
        num_scalar_prefetch=0,
        grid=(NB,),
        in_specs=[
            pl.BlockSpec((B, D), lambda i: (0, 0)),           # all feats
            pl.BlockSpec((TA, D), lambda i: (i, 0)),          # anchor feats block
            pl.BlockSpec((1, B), lambda i: (0, 0)),           # ||x||^2 (row)
            pl.BlockSpec((1, 1, TA), lambda i: (i, 0, 0)),    # anchor ||x||^2 (row)
            pl.BlockSpec((1, B), lambda i: (0, 0)),           # labels (row)
            pl.BlockSpec((1, 1, TA), lambda i: (i, 0, 0)),    # anchor labels (row)
            pl.BlockSpec((B, 1), lambda i: (0, 0)),           # labels (col)
            pl.BlockSpec((TA, 1), lambda i: (i, 0)),          # anchor labels (col)
        ],
        out_specs=[
            pl.BlockSpec((1, 1, B), lambda i: (i, 0, 0)),     # per-block partial sums
            pl.BlockSpec((1, 1, B), lambda i: (i, 0, 0)),     # per-block partial counts
        ],
    )

    sum_part, cnt_part = pl.pallas_call(
        _triplet_block_kernel,
        out_shape=(jax.ShapeDtypeStruct((NB, 1, B), jnp.float32),
                   jax.ShapeDtypeStruct((NB, 1, B), jnp.float32)),
        grid_spec=grid_spec,
        compiler_params=pltpu.CompilerParams(
            dimension_semantics=("parallel",)),
    )(feats, feats, sqn_row, sqn_blk, lab_row, lab_blk, lab_col, lab_col)

    total = jnp.sum(sum_part)
    n_pos = jnp.sum(cnt_part)
    return total / (n_pos + _EPS)


def _reference_batch_all_triplet_loss(feats, labels, margin):
    """Pure-JAX reference mirroring the PyTorch batch_all_triplet_loss."""
    dot = feats @ feats.T
    sqn = jnp.diag(dot)
    d2 = sqn[None, :] - 2.0 * dot + sqn[:, None]
    d2 = jnp.maximum(d2, 0.0)
    zm = (d2 == 0.0).astype(jnp.float32)
    dist = jnp.sqrt(d2 + zm * 1e-16) * (1.0 - zm)
    tl = dist[:, :, None] - dist[:, None, :] + margin
    ne = ~jnp.eye(feats.shape[0], dtype=bool)
    distinct = ne[:, :, None] & ne[:, None, :] & ne[None, :, :]
    le = labels[:, None] == labels[None, :]
    valid = le[:, :, None] & (~le[:, None, :])
    mask = (distinct & valid).astype(jnp.float32)
    tl = jnp.maximum(mask * tl, 0.0)
    n_pos = jnp.sum(tl > 1e-16)
    return jnp.sum(tl) / (n_pos + 1e-16)


if __name__ == "__main__":
    B, D = 16, 32
    key = jax.random.PRNGKey(0)
    kf, kl = jax.random.split(key)
    feats = jax.random.normal(kf, (B, D), dtype=jnp.float32)
    labels = jax.random.randint(kl, (B,), 0, 3, dtype=jnp.int32)

    loss = exp_triplet_loss(feats, labels, anchor_block=8)   # grid=(2,)
    loss = jax.block_until_ready(loss)

    ref = _reference_batch_all_triplet_loss(feats, labels, MARGIN)
    assert jnp.abs(loss - ref) < 5e-4, (loss, ref)
    print("KERNEL_OK")
</pallas_src>

<mosaic_0001>
module attributes {stable_mosaic.version = 11 : i64} {
  func.func @_triplet_block_kernel(%arg0: i32, %arg1: memref<16x32xf32, #tpu.memory_space<vmem>>, %arg2: memref<8x32xf32, #tpu.memory_space<vmem>>, %arg3: memref<1x16xf32, #tpu.memory_space<vmem>>, %arg4: memref<1x1x8xf32, #tpu.memory_space<vmem>>, %arg5: memref<1x16xi32, #tpu.memory_space<vmem>>, %arg6: memref<1x1x8xi32, #tpu.memory_space<vmem>>, %arg7: memref<16x1xi32, #tpu.memory_space<vmem>>, %arg8: memref<8x1xi32, #tpu.memory_space<vmem>>, %arg9: memref<1x1x16xf32, #tpu.memory_space<vmem>>, %arg10: memref<1x1x16xf32, #tpu.memory_space<vmem>>) attributes {dimension_semantics = [#tpu.dimension_semantics<parallel>], iteration_bounds = array<i64: 2>, scalar_prefetch = 0 : i64, scratch_operands = 0 : i64, tpu.core_type = #tpu.core_type<tc>, window_params = [{pipeline_mode = #tpu.pipeline_mode<synchronous>, transform_indices = @transform_0, window_bounds = array<i64: 16, 32>}, {transform_indices = @transform_1, window_bounds = array<i64: 8, 32>}, {pipeline_mode = #tpu.pipeline_mode<synchronous>, transform_indices = @transform_2, window_bounds = array<i64: 1, 16>}, {transform_indices = @transform_3, window_bounds = array<i64: 1, 1, 8>}, {pipeline_mode = #tpu.pipeline_mode<synchronous>, transform_indices = @transform_4, window_bounds = array<i64: 1, 16>}, {transform_indices = @transform_5, window_bounds = array<i64: 1, 1, 8>}, {pipeline_mode = #tpu.pipeline_mode<synchronous>, transform_indices = @transform_6, window_bounds = array<i64: 16, 1>}, {transform_indices = @transform_7, window_bounds = array<i64: 8, 1>}, {transform_indices = @transform_8, window_bounds = array<i64: 1, 1, 16>}, {transform_indices = @transform_9, window_bounds = array<i64: 1, 1, 16>}]} {
    %c0 = arith.constant 0 : index
    %c0_0 = arith.constant 0 : index
    %0 = vector.load %arg1[%c0, %c0_0] : memref<16x32xf32, #tpu.memory_space<vmem>>, vector<16x32xf32>
    %c0_1 = arith.constant 0 : index
    %c0_2 = arith.constant 0 : index
    %1 = vector.load %arg2[%c0_1, %c0_2] : memref<8x32xf32, #tpu.memory_space<vmem>>, vector<8x32xf32>
    %c0_3 = arith.constant 0 : index
    %c0_4 = arith.constant 0 : index
    %2 = vector.load %arg3[%c0_3, %c0_4] : memref<1x16xf32, #tpu.memory_space<vmem>>, vector<1x16xf32>
    %c0_5 = arith.constant 0 : index
    %c0_6 = arith.constant 0 : index
    %3 = vector.load %arg5[%c0_5, %c0_6] : memref<1x16xi32, #tpu.memory_space<vmem>>, vector<1x16xi32>
    %c0_7 = arith.constant 0 : index
    %c0_8 = arith.constant 0 : index
    %4 = vector.load %arg7[%c0_7, %c0_8] : memref<16x1xi32, #tpu.memory_space<vmem>>, vector<16x1xi32>
    %c0_9 = arith.constant 0 : index
    %c0_10 = arith.constant 0 : index
    %5 = vector.load %arg8[%c0_9, %c0_10] : memref<8x1xi32, #tpu.memory_space<vmem>>, vector<8x1xi32>
    %c0_11 = arith.constant 0 : index
    %c0_12 = arith.constant 0 : index
    %c0_13 = arith.constant 0 : index
    %6 = vector.load %arg4[%c0_11, %c0_12, %c0_13] : memref<1x1x8xf32, #tpu.memory_space<vmem>>, vector<1x1x8xf32>
    %7 = vector.shape_cast %6 : vector<1x1x8xf32> to vector<1x8xf32>
    %c0_14 = arith.constant 0 : index
    %c0_15 = arith.constant 0 : index
    %c0_16 = arith.constant 0 : index
    %8 = vector.load %arg6[%c0_14, %c0_15, %c0_16] : memref<1x1x8xi32, #tpu.memory_space<vmem>>, vector<1x1x8xi32>
    %9 = vector.shape_cast %8 : vector<1x1x8xi32> to vector<1x8xi32>
    %10 = arith.mulf %0, %0 : vector<16x32xf32>
    %cst = arith.constant dense<0.000000e+00> : vector<16xf32>
    %11 = vector.multi_reduction <add>, %10, %cst [1] : vector<16x32xf32> to vector<16xf32>
    %12 = vector.shape_cast %11 : vector<16xf32> to vector<16x1xf32>
    %13 = arith.mulf %1, %1 : vector<8x32xf32>
    %cst_17 = arith.constant dense<0.000000e+00> : vector<8xf32>
    %14 = vector.multi_reduction <add>, %13, %cst_17 [1] : vector<8x32xf32> to vector<8xf32>
    %15 = vector.shape_cast %14 : vector<8xf32> to vector<8x1xf32>
    %cst_18 = arith.constant dense<0.000000e+00> : vector<16x8xf32>
    %16 = tpu.matmul %0, %1, %cst_18 {dimension_numbers = #tpu.dot_dimension_numbers<[1], [1], [0], [0], [0, 0, 1, 0], [], []>} : vector<16x32xf32>, vector<8x32xf32>, vector<16x8xf32> -> vector<16x8xf32>
    %cst_19 = arith.constant dense<0.000000e+00> : vector<8x16xf32>
    %17 = tpu.matmul %1, %0, %cst_19 {dimension_numbers = #tpu.dot_dimension_numbers<[1], [1], [0], [0], [0, 0, 1, 0], [], []>} : vector<8x32xf32>, vector<16x32xf32>, vector<8x16xf32> -> vector<8x16xf32>
    %18 = vector.broadcast %12 : vector<16x1xf32> to vector<16x8xf32>
    %19 = vector.broadcast %7 : vector<1x8xf32> to vector<16x8xf32>
    %20 = arith.addf %18, %19 : vector<16x8xf32>
    %cst_20 = arith.constant 2.000000e+00 : f32
    %21 = vector.broadcast %cst_20 : f32 to vector<16x8xf32>
    %22 = arith.mulf %21, %16 : vector<16x8xf32>
    %23 = arith.subf %20, %22 : vector<16x8xf32>
    %cst_21 = arith.constant 0.000000e+00 : f32
    %24 = vector.broadcast %cst_21 : f32 to vector<16x8xf32>
    %25 = arith.maximumf %23, %24 : vector<16x8xf32>
    %26 = vector.broadcast %15 : vector<8x1xf32> to vector<8x16xf32>
    %27 = vector.broadcast %2 : vector<1x16xf32> to vector<8x16xf32>
    %28 = arith.addf %26, %27 : vector<8x16xf32>
    %cst_22 = arith.constant 2.000000e+00 : f32
    %29 = vector.broadcast %cst_22 : f32 to vector<8x16xf32>
    %30 = arith.mulf %29, %17 : vector<8x16xf32>
    %31 = arith.subf %28, %30 : vector<8x16xf32>
    %cst_23 = arith.constant 0.000000e+00 : f32
    %32 = vector.broadcast %cst_23 : f32 to vector<8x16xf32>
    %33 = arith.maximumf %31, %32 : vector<8x16xf32>
    %cst_24 = arith.constant 0.000000e+00 : f32
    %34 = vector.broadcast %cst_24 : f32 to vector<16x8xf32>
    %35 = arith.cmpf oeq, %25, %34 : vector<16x8xf32>
    %36 = arith.extui %35 : vector<16x8xi1> to vector<16x8xi32>
    %37 = arith.sitofp %36 : vector<16x8xi32> to vector<16x8xf32>
    %cst_25 = arith.constant 1.000000e-16 : f32
    %38 = vector.broadcast %cst_25 : f32 to vector<16x8xf32>
    %39 = arith.mulf %37, %38 : vector<16x8xf32>
    %40 = arith.addf %25, %39 : vector<16x8xf32>
    %41 = math.sqrt %40 : vector<16x8xf32>
    %cst_26 = arith.constant 1.000000e+00 : f32
    %42 = vector.broadcast %cst_26 : f32 to vector<16x8xf32>
    %43 = arith.subf %42, %37 : vector<16x8xf32>
    %44 = arith.mulf %41, %43 : vector<16x8xf32>
    %cst_27 = arith.constant 0.000000e+00 : f32
    %45 = vector.broadcast %cst_27 : f32 to vector<8x16xf32>
    %46 = arith.cmpf oeq, %33, %45 : vector<8x16xf32>
    %47 = arith.extui %46 : vector<8x16xi1> to vector<8x16xi32>
    %48 = arith.sitofp %47 : vector<8x16xi32> to vector<8x16xf32>
    %cst_28 = arith.constant 1.000000e-16 : f32
    %49 = vector.broadcast %cst_28 : f32 to vector<8x16xf32>
    %50 = arith.mulf %48, %49 : vector<8x16xf32>
    %51 = arith.addf %33, %50 : vector<8x16xf32>
    %52 = math.sqrt %51 : vector<8x16xf32>
    %cst_29 = arith.constant 1.000000e+00 : f32
    %53 = vector.broadcast %cst_29 : f32 to vector<8x16xf32>
    %54 = arith.subf %53, %48 : vector<8x16xf32>
    %55 = arith.mulf %52, %54 : vector<8x16xf32>
    %56 = tpu.iota {dimensions = array<i32: 0>} : vector<16x8xi32>
    %c8_i32 = arith.constant 8 : i32
    %57 = arith.muli %arg0, %c8_i32 : i32
    %58 = tpu.iota {dimensions = array<i32: 1>} : vector<16x8xi32>
    %59 = vector.broadcast %57 : i32 to vector<16x8xi32>
    %60 = arith.addi %59, %58 : vector<16x8xi32>
    %61 = vector.broadcast %4 : vector<16x1xi32> to vector<16x8xi32>
    %62 = vector.broadcast %9 : vector<1x8xi32> to vector<16x8xi32>
    %63 = arith.cmpi eq, %61, %62 : vector<16x8xi32>
    %64 = arith.cmpi ne, %56, %60 : vector<16x8xi32>
    %65 = arith.andi %63, %64 : vector<16x8xi1>
    %66 = vector.broadcast %5 : vector<8x1xi32> to vector<8x16xi32>
    %67 = vector.broadcast %3 : vector<1x16xi32> to vector<8x16xi32>
    %68 = arith.cmpi ne, %66, %67 : vector<8x16xi32>
    %cst_30 = arith.constant -1.000000e+30 : f32
    %69 = vector.broadcast %cst_30 : f32 to vector<16x8xf32>
    %70 = arith.select %65, %44, %69 : vector<16x8xi1>, vector<16x8xf32>
    %cst_31 = arith.constant 1.000000e+30 : f32
    %71 = vector.broadcast %cst_31 : f32 to vector<8x16xf32>
    %72 = arith.select %68, %55, %71 : vector<8x16xi1>, vector<8x16xf32>
    %cst_32 = arith.constant 0.000000e+00 : f32
    %73 = vector.broadcast %cst_32 : f32 to vector<1x16xf32>
    %cst_33 = arith.constant 0.000000e+00 : f32
    %74 = vector.broadcast %cst_33 : f32 to vector<1x16xf32>
    %75 = vector.extract_strided_slice %70 {offsets = [0, 0], sizes = [16, 1], strides = [1, 1]} : vector<16x8xf32> to vector<16x1xf32>
    %76 = vector.extract_strided_slice %72 {offsets = [0, 0], sizes = [1, 16], strides = [1, 1]} : vector<8x16xf32> to vector<1x16xf32>
    %77 = vector.broadcast %75 : vector<16x1xf32> to vector<16x16xf32>
    %78 = vector.broadcast %76 : vector<1x16xf32> to vector<16x16xf32>
    %79 = arith.subf %77, %78 : vector<16x16xf32>
    %cst_34 = arith.constant 1.000000e+00 : f32
    %80 = vector.broadcast %cst_34 : f32 to vector<16x16xf32>
    %81 = arith.addf %79, %80 : vector<16x16xf32>
    %cst_35 = arith.constant 0.000000e+00 : f32
    %82 = vector.broadcast %cst_35 : f32 to vector<16x16xf32>
    %83 = arith.maximumf %81, %82 : vector<16x16xf32>
    %cst_36 = arith.constant dense<0.000000e+00> : vector<16xf32>
    %84 = vector.multi_reduction <add>, %83, %cst_36 [0] : vector<16x16xf32> to vector<16xf32>
    %85 = vector.shape_cast %84 : vector<16xf32> to vector<1x16xf32>
    %86 = arith.addf %73, %85 : vector<1x16xf32>
    %cst_37 = arith.constant 1.000000e-16 : f32
    %87 = vector.broadcast %cst_37 : f32 to vector<16x16xf32>
    %88 = arith.cmpf ogt, %83, %87 : vector<16x16xf32>
    %89 = arith.extui %88 : vector<16x16xi1> to vector<16x16xi32>
    %90 = arith.sitofp %89 : vector<16x16xi32> to vector<16x16xf32>
    %cst_38 = arith.constant dense<0.000000e+00> : vector<16xf32>
    %91 = vector.multi_reduction <add>, %90, %cst_38 [0] : vector<16x16xf32> to vector<16xf32>
    %92 = vector.shape_cast %91 : vector<16xf32> to vector<1x16xf32>
    %93 = arith.addf %74, %92 : vector<1x16xf32>
    %94 = vector.extract_strided_slice %70 {offsets = [0, 1], sizes = [16, 1], strides = [1, 1]} : vector<16x8xf32> to vector<16x1xf32>
    %95 = vector.extract_strided_slice %72 {offsets = [1, 0], sizes = [1, 16], strides = [1, 1]} : vector<8x16xf32> to vector<1x16xf32>
    %96 = vector.broadcast %94 : vector<16x1xf32> to vector<16x16xf32>
    %97 = vector.broadcast %95 : vector<1x16xf32> to vector<16x16xf32>
    %98 = arith.subf %96, %97 : vector<16x16xf32>
    %cst_39 = arith.constant 1.000000e+00 : f32
    %99 = vector.broadcast %cst_39 : f32 to vector<16x16xf32>
    %100 = arith.addf %98, %99 : vector<16x16xf32>
    %cst_40 = arith.constant 0.000000e+00 : f32
    %101 = vector.broadcast %cst_40 : f32 to vector<16x16xf32>
    %102 = arith.maximumf %100, %101 : vector<16x16xf32>
    %cst_41 = arith.constant dense<0.000000e+00> : vector<16xf32>
    %103 = vector.multi_reduction <add>, %102, %cst_41 [0] : vector<16x16xf32> to vector<16xf32>
    %104 = vector.shape_cast %103 : vector<16xf32> to vector<1x16xf32>
    %105 = arith.addf %86, %104 : vector<1x16xf32>
    %cst_42 = arith.constant 1.000000e-16 : f32
    %106 = vector.broadcast %cst_42 : f32 to vector<16x16xf32>
    %107 = arith.cmpf ogt, %102, %106 : vector<16x16xf32>
    %108 = arith.extui %107 : vector<16x16xi1> to vector<16x16xi32>
    %109 = arith.sitofp %108 : vector<16x16xi32> to vector<16x16xf32>
    %cst_43 = arith.constant dense<0.000000e+00> : vector<16xf32>
    %110 = vector.multi_reduction <add>, %109, %cst_43 [0] : vector<16x16xf32> to vector<16xf32>
    %111 = vector.shape_cast %110 : vector<16xf32> to vector<1x16xf32>
    %112 = arith.addf %93, %111 : vector<1x16xf32>
    %113 = vector.extract_strided_slice %70 {offsets = [0, 2], sizes = [16, 1], strides = [1, 1]} : vector<16x8xf32> to vector<16x1xf32>
    %114 = vector.extract_strided_slice %72 {offsets = [2, 0], sizes = [1, 16], strides = [1, 1]} : vector<8x16xf32> to vector<1x16xf32>
    %115 = vector.broadcast %113 : vector<16x1xf32> to vector<16x16xf32>
    %116 = vector.broadcast %114 : vector<1x16xf32> to vector<16x16xf32>
    %117 = arith.subf %115, %116 : vector<16x16xf32>
    %cst_44 = arith.constant 1.000000e+00 : f32
    %118 = vector.broadcast %cst_44 : f32 to vector<16x16xf32>
    %119 = arith.addf %117, %118 : vector<16x16xf32>
    %cst_45 = arith.constant 0.000000e+00 : f32
    %120 = vector.broadcast %cst_45 : f32 to vector<16x16xf32>
    %121 = arith.maximumf %119, %120 : vector<16x16xf32>
    %cst_46 = arith.constant dense<0.000000e+00> : vector<16xf32>
    %122 = vector.multi_reduction <add>, %121, %cst_46 [0] : vector<16x16xf32> to vector<16xf32>
    %123 = vector.shape_cast %122 : vector<16xf32> to vector<1x16xf32>
    %124 = arith.addf %105, %123 : vector<1x16xf32>
    %cst_47 = arith.constant 1.000000e-16 : f32
    %125 = vector.broadcast %cst_47 : f32 to vector<16x16xf32>
    %126 = arith.cmpf ogt, %121, %125 : vector<16x16xf32>
    %127 = arith.extui %126 : vector<16x16xi1> to vector<16x16xi32>
    %128 = arith.sitofp %127 : vector<16x16xi32> to vector<16x16xf32>
    %cst_48 = arith.constant dense<0.000000e+00> : vector<16xf32>
    %129 = vector.multi_reduction <add>, %128, %cst_48 [0] : vector<16x16xf32> to vector<16xf32>
    %130 = vector.shape_cast %129 : vector<16xf32> to vector<1x16xf32>
    %131 = arith.addf %112, %130 : vector<1x16xf32>
    %132 = vector.extract_strided_slice %70 {offsets = [0, 3], sizes = [16, 1], strides = [1, 1]} : vector<16x8xf32> to vector<16x1xf32>
    %133 = vector.extract_strided_slice %72 {offsets = [3, 0], sizes = [1, 16], strides = [1, 1]} : vector<8x16xf32> to vector<1x16xf32>
    %134 = vector.broadcast %132 : vector<16x1xf32> to vector<16x16xf32>
    %135 = vector.broadcast %133 : vector<1x16xf32> to vector<16x16xf32>
    %136 = arith.subf %134, %135 : vector<16x16xf32>
    %cst_49 = arith.constant 1.000000e+00 : f32
    %137 = vector.broadcast %cst_49 : f32 to vector<16x16xf32>
    %138 = arith.addf %136, %137 : vector<16x16xf32>
    %cst_50 = arith.constant 0.000000e+00 : f32
    %139 = vector.broadcast %cst_50 : f32 to vector<16x16xf32>
    %140 = arith.maximumf %138, %139 : vector<16x16xf32>
    %cst_51 = arith.constant dense<0.000000e+00> : vector<16xf32>
    %141 = vector.multi_reduction <add>, %140, %cst_51 [0] : vector<16x16xf32> to vector<16xf32>
    %142 = vector.shape_cast %141 : vector<16xf32> to vector<1x16xf32>
    %143 = arith.addf %124, %142 : vector<1x16xf32>
    %cst_52 = arith.constant 1.000000e-16 : f32
    %144 = vector.broadcast %cst_52 : f32 to vector<16x16xf32>
    %145 = arith.cmpf ogt, %140, %144 : vector<16x16xf32>
    %146 = arith.extui %145 : vector<16x16xi1> to vector<16x16xi32>
    %147 = arith.sitofp %146 : vector<16x16xi32> to vector<16x16xf32>
    %cst_53 = arith.constant dense<0.000000e+00> : vector<16xf32>
    %148 = vector.multi_reduction <add>, %147, %cst_53 [0] : vector<16x16xf32> to vector<16xf32>
    %149 = vector.shape_cast %148 : vector<16xf32> to vector<1x16xf32>
    %150 = arith.addf %131, %149 : vector<1x16xf32>
    %151 = vector.extract_strided_slice %70 {offsets = [0, 4], sizes = [16, 1], strides = [1, 1]} : vector<16x8xf32> to vector<16x1xf32>
    %152 = vector.extract_strided_slice %72 {offsets = [4, 0], sizes = [1, 16], strides = [1, 1]} : vector<8x16xf32> to vector<1x16xf32>
    %153 = vector.broadcast %151 : vector<16x1xf32> to vector<16x16xf32>
    %154 = vector.broadcast %152 : vector<1x16xf32> to vector<16x16xf32>
    %155 = arith.subf %153, %154 : vector<16x16xf32>
    %cst_54 = arith.constant 1.000000e+00 : f32
    %156 = vector.broadcast %cst_54 : f32 to vector<16x16xf32>
    %157 = arith.addf %155, %156 : vector<16x16xf32>
    %cst_55 = arith.constant 0.000000e+00 : f32
    %158 = vector.broadcast %cst_55 : f32 to vector<16x16xf32>
    %159 = arith.maximumf %157, %158 : vector<16x16xf32>
    %cst_56 = arith.constant dense<0.000000e+00> : vector<16xf32>
    %160 = vector.multi_reduction <add>, %159, %cst_56 [0] : vector<16x16xf32> to vector<16xf32>
    %161 = vector.shape_cast %160 : vector<16xf32> to vector<1x16xf32>
    %162 = arith.addf %143, %161 : vector<1x16xf32>
    %cst_57 = arith.constant 1.000000e-16 : f32
    %163 = vector.broadcast %cst_57 : f32 to vector<16x16xf32>
    %164 = arith.cmpf ogt, %159, %163 : vector<16x16xf32>
    %165 = arith.extui %164 : vector<16x16xi1> to vector<16x16xi32>
    %166 = arith.sitofp %165 : vector<16x16xi32> to vector<16x16xf32>
    %cst_58 = arith.constant dense<0.000000e+00> : vector<16xf32>
    %167 = vector.multi_reduction <add>, %166, %cst_58 [0] : vector<16x16xf32> to vector<16xf32>
    %168 = vector.shape_cast %167 : vector<16xf32> to vector<1x16xf32>
    %169 = arith.addf %150, %168 : vector<1x16xf32>
    %170 = vector.extract_strided_slice %70 {offsets = [0, 5], sizes = [16, 1], strides = [1, 1]} : vector<16x8xf32> to vector<16x1xf32>
    %171 = vector.extract_strided_slice %72 {offsets = [5, 0], sizes = [1, 16], strides = [1, 1]} : vector<8x16xf32> to vector<1x16xf32>
    %172 = vector.broadcast %170 : vector<16x1xf32> to vector<16x16xf32>
    %173 = vector.broadcast %171 : vector<1x16xf32> to vector<16x16xf32>
    %174 = arith.subf %172, %173 : vector<16x16xf32>
    %cst_59 = arith.constant 1.000000e+00 : f32
    %175 = vector.broadcast %cst_59 : f32 to vector<16x16xf32>
    %176 = arith.addf %174, %175 : vector<16x16xf32>
    %cst_60 = arith.constant 0.000000e+00 : f32
    %177 = vector.broadcast %cst_60 : f32 to vector<16x16xf32>
    %178 = arith.maximumf %176, %177 : vector<16x16xf32>
    %cst_61 = arith.constant dense<0.000000e+00> : vector<16xf32>
    %179 = vector.multi_reduction <add>, %178, %cst_61 [0] : vector<16x16xf32> to vector<16xf32>
    %180 = vector.shape_cast %179 : vector<16xf32> to vector<1x16xf32>
    %181 = arith.addf %162, %180 : vector<1x16xf32>
    %cst_62 = arith.constant 1.000000e-16 : f32
    %182 = vector.broadcast %cst_62 : f32 to vector<16x16xf32>
    %183 = arith.cmpf ogt, %178, %182 : vector<16x16xf32>
    %184 = arith.extui %183 : vector<16x16xi1> to vector<16x16xi32>
    %185 = arith.sitofp %184 : vector<16x16xi32> to vector<16x16xf32>
    %cst_63 = arith.constant dense<0.000000e+00> : vector<16xf32>
    %186 = vector.multi_reduction <add>, %185, %cst_63 [0] : vector<16x16xf32> to vector<16xf32>
    %187 = vector.shape_cast %186 : vector<16xf32> to vector<1x16xf32>
    %188 = arith.addf %169, %187 : vector<1x16xf32>
    %189 = vector.extract_strided_slice %70 {offsets = [0, 6], sizes = [16, 1], strides = [1, 1]} : vector<16x8xf32> to vector<16x1xf32>
    %190 = vector.extract_strided_slice %72 {offsets = [6, 0], sizes = [1, 16], strides = [1, 1]} : vector<8x16xf32> to vector<1x16xf32>
    %191 = vector.broadcast %189 : vector<16x1xf32> to vector<16x16xf32>
    %192 = vector.broadcast %190 : vector<1x16xf32> to vector<16x16xf32>
    %193 = arith.subf %191, %192 : vector<16x16xf32>
    %cst_64 = arith.constant 1.000000e+00 : f32
    %194 = vector.broadcast %cst_64 : f32 to vector<16x16xf32>
    %195 = arith.addf %193, %194 : vector<16x16xf32>
    %cst_65 = arith.constant 0.000000e+00 : f32
    %196 = vector.broadcast %cst_65 : f32 to vector<16x16xf32>
    %197 = arith.maximumf %195, %196 : vector<16x16xf32>
    %cst_66 = arith.constant dense<0.000000e+00> : vector<16xf32>
    %198 = vector.multi_reduction <add>, %197, %cst_66 [0] : vector<16x16xf32> to vector<16xf32>
    %199 = vector.shape_cast %198 : vector<16xf32> to vector<1x16xf32>
    %200 = arith.addf %181, %199 : vector<1x16xf32>
    %cst_67 = arith.constant 1.000000e-16 : f32
    %201 = vector.broadcast %cst_67 : f32 to vector<16x16xf32>
    %202 = arith.cmpf ogt, %197, %201 : vector<16x16xf32>
    %203 = arith.extui %202 : vector<16x16xi1> to vector<16x16xi32>
    %204 = arith.sitofp %203 : vector<16x16xi32> to vector<16x16xf32>
    %cst_68 = arith.constant dense<0.000000e+00> : vector<16xf32>
    %205 = vector.multi_reduction <add>, %204, %cst_68 [0] : vector<16x16xf32> to vector<16xf32>
    %206 = vector.shape_cast %205 : vector<16xf32> to vector<1x16xf32>
    %207 = arith.addf %188, %206 : vector<1x16xf32>
    %208 = vector.extract_strided_slice %70 {offsets = [0, 7], sizes = [16, 1], strides = [1, 1]} : vector<16x8xf32> to vector<16x1xf32>
    %209 = vector.extract_strided_slice %72 {offsets = [7, 0], sizes = [1, 16], strides = [1, 1]} : vector<8x16xf32> to vector<1x16xf32>
    %210 = vector.broadcast %208 : vector<16x1xf32> to vector<16x16xf32>
    %211 = vector.broadcast %209 : vector<1x16xf32> to vector<16x16xf32>
    %212 = arith.subf %210, %211 : vector<16x16xf32>
    %cst_69 = arith.constant 1.000000e+00 : f32
    %213 = vector.broadcast %cst_69 : f32 to vector<16x16xf32>
    %214 = arith.addf %212, %213 : vector<16x16xf32>
    %cst_70 = arith.constant 0.000000e+00 : f32
    %215 = vector.broadcast %cst_70 : f32 to vector<16x16xf32>
    %216 = arith.maximumf %214, %215 : vector<16x16xf32>
    %cst_71 = arith.constant dense<0.000000e+00> : vector<16xf32>
    %217 = vector.multi_reduction <add>, %216, %cst_71 [0] : vector<16x16xf32> to vector<16xf32>
    %218 = vector.shape_cast %217 : vector<16xf32> to vector<1x16xf32>
    %219 = arith.addf %200, %218 : vector<1x16xf32>
    %cst_72 = arith.constant 1.000000e-16 : f32
    %220 = vector.broadcast %cst_72 : f32 to vector<16x16xf32>
    %221 = arith.cmpf ogt, %216, %220 : vector<16x16xf32>
    %222 = arith.extui %221 : vector<16x16xi1> to vector<16x16xi32>
    %223 = arith.sitofp %222 : vector<16x16xi32> to vector<16x16xf32>
    %cst_73 = arith.constant dense<0.000000e+00> : vector<16xf32>
    %224 = vector.multi_reduction <add>, %223, %cst_73 [0] : vector<16x16xf32> to vector<16xf32>
    %225 = vector.shape_cast %224 : vector<16xf32> to vector<1x16xf32>
    %226 = arith.addf %207, %225 : vector<1x16xf32>
    %227 = vector.shape_cast %219 : vector<1x16xf32> to vector<1x1x16xf32>
    %c0_74 = arith.constant 0 : index
    %c0_75 = arith.constant 0 : index
    %c0_76 = arith.constant 0 : index
    %228 = vector.load %arg9[%c0_74, %c0_75, %c0_76] : memref<1x1x16xf32, #tpu.memory_space<vmem>>, vector<1x1x16xf32>
    tpu.vector_store %arg9[%c0_74, %c0_75, %c0_76], %227 {strides = array<i32>} : memref<1x1x16xf32, #tpu.memory_space<vmem>>, vector<1x1x16xf32>,
    %229 = vector.shape_cast %226 : vector<1x16xf32> to vector<1x1x16xf32>
    %c0_77 = arith.constant 0 : index
    %c0_78 = arith.constant 0 : index
    %c0_79 = arith.constant 0 : index
    %230 = vector.load %arg10[%c0_77, %c0_78, %c0_79] : memref<1x1x16xf32, #tpu.memory_space<vmem>>, vector<1x1x16xf32>
    tpu.vector_store %arg10[%c0_77, %c0_78, %c0_79], %229 {strides = array<i32>} : memref<1x1x16xf32, #tpu.memory_space<vmem>>, vector<1x1x16xf32>,
    return
  }
  func.func @transform_0(%arg0: i32) -> (i32, i32) {
    %c0_i32 = arith.constant 0 : i32
    %c0_i32_0 = arith.constant 0 : i32
    %c0_i32_1 = arith.constant 0 : i32
    return %c0_i32, %c0_i32_0 : i32, i32
  }
  func.func @transform_1(%arg0: i32) -> (i32, i32) {
    %c0_i32 = arith.constant 0 : i32
    %c0_i32_0 = arith.constant 0 : i32
    return %arg0, %c0_i32 : i32, i32
  }
  func.func @transform_2(%arg0: i32) -> (i32, i32) {
    %c0_i32 = arith.constant 0 : i32
    %c0_i32_0 = arith.constant 0 : i32
    %c0_i32_1 = arith.constant 0 : i32
    return %c0_i32, %c0_i32_0 : i32, i32
  }
  func.func @transform_3(%arg0: i32) -> (i32, i32, i32) {
    %c0_i32 = arith.constant 0 : i32
    %c0_i32_0 = arith.constant 0 : i32
    %c0_i32_1 = arith.constant 0 : i32
    return %arg0, %c0_i32, %c0_i32_0 : i32, i32, i32
  }
  func.func @transform_4(%arg0: i32) -> (i32, i32) {
    %c0_i32 = arith.constant 0 : i32
    %c0_i32_0 = arith.constant 0 : i32
    %c0_i32_1 = arith.constant 0 : i32
    return %c0_i32, %c0_i32_0 : i32, i32
  }
  func.func @transform_5(%arg0: i32) -> (i32, i32, i32) {
    %c0_i32 = arith.constant 0 : i32
    %c0_i32_0 = arith.constant 0 : i32
    %c0_i32_1 = arith.constant 0 : i32
    return %arg0, %c0_i32, %c0_i32_0 : i32, i32, i32
  }
  func.func @transform_6(%arg0: i32) -> (i32, i32) {
    %c0_i32 = arith.constant 0 : i32
    %c0_i32_0 = arith.constant 0 : i32
    %c0_i32_1 = arith.constant 0 : i32
    return %c0_i32, %c0_i32_0 : i32, i32
  }
  func.func @transform_7(%arg0: i32) -> (i32, i32) {
    %c0_i32 = arith.constant 0 : i32
    %c0_i32_0 = arith.constant 0 : i32
    return %arg0, %c0_i32 : i32, i32
  }
  func.func @transform_8(%arg0: i32) -> (i32, i32, i32) {
    %c0_i32 = arith.constant 0 : i32
    %c0_i32_0 = arith.constant 0 : i32
    %c0_i32_1 = arith.constant 0 : i32
    return %arg0, %c0_i32, %c0_i32_0 : i32, i32, i32
  }
  func.func @transform_9(%arg0: i32) -> (i32, i32, i32) {
    %c0_i32 = arith.constant 0 : i32
    %c0_i32_0 = arith.constant 0 : i32
    %c0_i32_1 = arith.constant 0 : i32
    return %arg0, %c0_i32, %c0_i32_0 : i32, i32, i32
  }
}

</mosaic_0001>

<bundles_post_ra>
// kernel: tpu_custom_call.1
= control target key start
LH: loop header
LB: loop body
LE: loop exit
PB: predicated region body
PF: predicated region fallthrough
CT: control target
= control target key end

     0   :  { %s1807_s0 = inlined_call_operand.vmem [shape: f32[16,32], index: 0, kind: input, shape index: {}]   ;;  %s1808_s1 = inlined_call_operand.vmem [shape: f32[16,32], index: 1, kind: input, shape index: {}]   ;;  %s1809_s2 = inlined_call_operand.vmem [shape: f32[1,16], index: 2, kind: input, shape index: {}]   ;;  %s1810_s3 = inlined_call_operand.hbm [shape: f32[2,1,8], index: 3, kind: input, shape index: {}]   ;;  %s1811_s4 = inlined_call_operand.hbm [shape: s32[1,16], index: 4, kind: input, shape index: {}]   ;;  %s1812_s5 = inlined_call_operand.vmem [shape: s32[2,1,8], index: 5, kind: input, shape index: {}]   ;;  %s1813_s6 = inlined_call_operand.vmem [shape: s32[16,1], index: 6, kind: input, shape index: {}]   ;;  %s1814_s7 = inlined_call_operand.vmem [shape: s32[16,1], index: 7, kind: input, shape index: {}]   ;;  %s1815_s8 = inlined_call_operand.hbm [shape: f32[2,1,16], index: 8, kind: output, shape index: {0}]   ;;  %s1816_s9 = inlined_call_operand.hbm [shape: f32[2,1,16], index: 9, kind: output, shape index: {1}]  }
   0x1   :  { %1817 = sst [smem:[#allocation15_spill]] %s1811_s4 }
   0x2   :  { %15 = vsyncpa [#allocation3], 0 }
   0x3   :  { %17 = vsyncpa [#allocation3 + $0x1], 0 }
   0x4   :  { %18 = vsyncpa [#allocation6], 0 }
   0x5   :  { %19 = vsyncpa [#allocation4], 0 }
   0x6   :  { %21 = vsyncpa [#allocation4 + $0x1], 0 }
   0x7   :  { %22 = vsyncpa [#allocation9], 0 }
   0x8   :  { %24 = vsyncpa [#allocation9 + $0x1], 0  ;;  %s1454_s30 = smov 0   ;;  %s1456_s10 = smov 0  }
   0x9   :  { %s1458_s11 = smov 0   ;;  %s1460_s12 = smov 0  }
   0xa LB: > { %s1475_s13 = sadd.s32 4294967295, %s1392_s12   ;;  %s1094_s14 = sadd.s32 4294967294, %s1392_s12   ;;  %s1392_s12 = sphi %s1460_s12, %s1834_s12   ;;  %s1388_s11 = sphi %s1458_s11, %s1833_s11   ;;  %s1384_s10 = sphi %s1456_s10, %s1832_s10   ;;  %s1380_s30 = sphi %s1454_s30, %s1831_s30  }
   0xb   : > { %p118_p0 = scmp.ne.s32.totalorder %s1384_s10, %s1380_s30  ;;  %p119_p1 = scmp.eq.s32.totalorder %s1475_s13, 0 }
   0xc   : > { %p236_p2 = scmp.eq.s32.totalorder %s1475_s13, 1  ;;  %p242_p3 = scmp.eq.s32.totalorder %s1094_s14, 1 }
   0xd   : > { %p1484_p4 = por %p119_p1, %p118_p0  ;;  %p1095_p5 = scmp.ge.s32.totalorder %s1392_s12, 1 }
   0xe   : > { %p1489_p6 = por %p242_p3, %p118_p0  ;;  %p275_p7 = scmp.lt.s32.totalorder %s1392_s12, 3 }
   0xf   : > { %s1820_s4 = sld [smem:[#allocation15_spill]]  ;;  %s1394_s21 = smov [#allocation5]  }
  0x10   : > { %p1497_p8 = pnand %p1095_p5, %p275_p7  ;;  %s295_s22 = sshll.u32 %s1394_s21, 4  ;;  %s296_s22 = int_to_ptr.vmem [resolvable:$true] %s295_s22 }
  0x11   : > { %s1507_s23 = sadd.s32 1, %s1392_s12   ;;  %s105_s24 = sadd.s32 1, %s1388_s11 }
  0x12   : > { %p1141_p10 = pneg %p1497_p8  ;;  %s102_s25 = ssub.s32 %s1392_s12, %s1507_s23 }
  0x13   : > { %p103_p12 = scmp.eq.s32.totalorder %s102_s25, 0  ;;  %p112_p13 = scmp.ne.s32.totalorder %s1388_s11, %s1384_s10 }
  0x14   : > { %p1142_p11 = pnand %p1141_p10, %p119_p1  ;;  %p113_p0 = scmp.eq.s32.totalorder %s1392_s12, 0 }
  0x15   : > { %s293_s19 = sshll.u32 %s1820_s4, 4  ;;  %p1157_p3 = scmp.lt.s32.totalorder %s1392_s12, 2  ;;  %s294_s19 = int_to_ptr.hbm [resolvable:$true] %s293_s19 }
  0x16   : > { %1144 = dma.hbm_to_vmem [thread:$0]  (!%p1142_p11), %s294_s19, 16, %s296_s22, [#allocation6]  }
  0x17   : > { %s1517_s26 = scalar_select %p103_p12, %s1388_s11, %s105_s24  }
  0x18   : > { %p114_p5 = por %p113_p0, %p112_p13  ;;  %p1521_p7 = por %p236_p2, %p112_p13 }
  0x19   : > { %1822 = sst [smem:[#allocation14_spill]] %s1517_s26  ;;  %s316_s28 = sand.u32 1, %s1388_s11  }
  0x1a   : > { %s322_s17 = scalar_lea.hbm %s1810_s3, %s1392_s12  ;;  %s319_s21 = scalar_lea.vmem [#allocation2], %s316_s28 }
  0x1b   : > { %s324_s18 = sshll.u32 %s322_s17, 4  ;;  %s326_s19 = sshll.u32 %s319_s21, 4  ;;  %s325_s18 = int_to_ptr.hbm [resolvable:$true] %s324_s18  ;;  %s327_s19 = int_to_ptr.vmem [resolvable:$true] %s326_s19 }
  0x1c   : > { %p1530_p10 = pnand %p1157_p3, %p114_p5  ;;  %s317_s24 = scalar_lea.sflag [#allocation3], %s316_s28 }
  0x1d   : > { %s1260_s25 = sshra.s32 %s325_s18, 4  ;;  %s1267_s17 = scalar_lea.hbm %s1810_s3, 2  ;;  %s1261_s25 = int_to_ptr.hbm [resolvable:$true] %s1260_s25 }
  0x1e   : > { %s1262_s4 = scalar_lea.hbm %s1261_s25, 1  ;;  %p1264_p11 = pneg %p1530_p10 }
  0x1f   : > { %p1263_p2 = scmp.ne.s32.totalorder %s1261_s25, %s1262_s4  ;;  %p1268_p0 = scmp.lt.s32.totalorder %s1261_s25, %s1810_s3 }
  0x20   : > { %p1269_p3 = scmp.lt.s32.totalorder %s1267_s17, %s1262_s4 }
  0x21   : > { %p1265_p12 = pnand %p1264_p11, %p1263_p2 }
  0x22   : > { %p1270_p5 = por %p1269_p3, %p1268_p0 }
  0x23   : > { %p1266_p13 = pneg %p1265_p12 }
  0x25   : > { %p1271_p9 = pnand %p1270_p5, %p1266_p13 }
  0x27   : > { %1274 = shalt.err (!%p1271_p9)
}
  0x28   : > { %1148 = dma.hbm_to_vmem [thread:$0]  (!%p1530_p10), %s325_s18, 16, %s327_s19, %s317_s24  }
  0x29   : > { %348 = sbr.rel (%p1497_p8) target bundleno = 417 (0x1a1), region = 52  ;;  %s1547_s28 = sand.u32 (!%p1497_p8), 1, %s1384_s10  }
  0x2a   : > { %s351_s29 = scalar_lea.sflag (!%p1497_p8), [#allocation3], %s1547_s28  ;;  %s353_s14 = scalar_lea.vmem (!%p1497_p8), [#allocation2], %s1547_s28 }
  0x2e   : > { %1363 = dma.done.wait (%p1484_p4), %s351_s29, 16  }
  0x2f   : > { %1365 = vsyncadd (%p1484_p4), %s351_s29, 4294967280 }
  0x30   : > { %1367 = dma.done.wait (%p119_p1), [#allocation6], 16  }
  0x31   : > { %1369 = vsyncadd (%p119_p1), [#allocation6], 4294967280  ;;  %p407_p8 = scmp.lt.s32.totalorder %s1475_s13, 1  ;;  %v1395_v0 = vmov 0   ;;  %vm430_vm0 = vcmask 261120   ;;  %v419_v2 = vld [vmem:[%s1807_s0 + $0x8] sm:$0xff]  ;;  %v568_v35 = vlaneseq }
  0x32   : > { %1202 = vset.pattern.permute.xlu1 %v1395_v0  ;;  %1203 = vset.pattern.permute.xlu2 %v1395_v0  ;;  %v418_v3 = vld [vmem:[%s1807_s0] sm:$0xff]  ;;  %v424_v6 = vld [vmem:[%s1813_s6 + $0x8] sm:$0xff]  ;;  %v429_v9 = vmul.f32 %v419_v2, %v419_v2  ;;  %v1396_v22 = vmov 1   ;;  %v1397_v23 = vmov 2   ;;  %v1398_v26 = vmov 0.0   ;;  %s400_s24 = scalar_lea.vmem [#allocation7], %s1547_s28 }
  0x33   : > { %s1563_s4 = scalar_select %p407_p8, %s1475_s13, 1  ;;  %1204 = vset.pattern.permute.xlu0 %v1395_v0  ;;  %v428_v4 = vmul.f32 %v418_v3, %v418_v3  ;;  %1105 = vmatpush.xpose.msk.msra.mxu1 %vm430_vm0, %v419_v2  ;;  %v423_v12 = vld [vmem:[%s1813_s6] sm:$0xff]  ;;  %v573_v39 = vand.u32 127, %v568_v35  ;;  %v569_v44 = vshrl.u32 %v568_v35, 7 }
  0x34   : > { %580 = vperm.xlu2 %1203, %v424_v6   ;;  %v434_v11 = vsel %vm430_vm0, %v429_v9, 0.0  ;;  %v1220_v14 = vld [vmem:[%s353_s14] ss:$0 sm:$0xff]  ;;  %s1111_s14 = sshll.u32 %s1475_s13, 3  ;;  %v1223_v35 = vld [vmem:[#allocation5] ss:$0 sm:$0xff] }
  0x35   : > { %s1100_s15 = sshll.u32 %s1563_s4, 3  ;;  %v431_v7 = vsel %vm430_vm0, %v428_v4, 0.0  ;;  %s413_s22 = scalar_lea.vmem %s1812_s5, %s1563_s4  ;;  %v574_v41 = vstv %s1111_s14  ;;  %v570_v62 = vadd.s32 8, %v569_v44 }
  0x36   : > { %s410_s18 = scalar_lea.vmem %s1808_s1, %s1100_s15  ;;  %s417_s26 = scalar_lea.vmem %s1814_s7, %s1100_s15  ;;  %432 = vadd.xlane.f32.xlu0 %v431_v7  ;;  %v575_v45 = vadd.s32 %v574_v41, %v573_v39  ;;  %v1222_v46 = vld [vmem:[%s413_s22] ss:$0 sm:$0xff]  ;;  %v1399_v7 = vmov 3  }
  0x37   : > { %v420_v1 = vld [vmem:[%s410_s18] sm:$0xff]  ;;  %1106 = vmatpush.xpose.msk.msra.mxu1 %vm430_vm0, %v418_v3  ;;  %s957_s22 = scalar_lea.hbm %s1816_s9, %s1475_s13  ;;  %s1746_s25 = sshll.u32 %s400_s24, 4  ;;  %s947_s25 = int_to_ptr.vmem [resolvable:$true] %s1746_s25 }
  0x38   : > { %1102 = vmatpush.xpose.msk.msra.mxu0 %vm430_vm0, %v420_v1  ;;  %1130 = vmatpush.xpose.msk.msra.mxu2 %vm430_vm0, %v420_v1  ;;  %v437_v5 = vmul.f32 %v420_v1, %v420_v1  ;;  %v425_v10 = vld [vmem:[%s417_s26] sm:$0xff]  ;;  %vm585_vm3 = vcmp.ne.s32.totalorder %v569_v44, %v575_v45  ;;  %vm586_vm10 = vcmp.ne.s32.totalorder %v570_v62, %v575_v45  ;;  %s944_s26 = scalar_lea.hbm %s1815_s8, %s1475_s13  ;;  %s406_s15 = scalar_lea.vmem [#allocation8], %s1547_s28 }
  0x39   : > { %s1748_s14 = sshll.u32 %s944_s26, 4  ;;  %s1751_s17 = sshll.u32 %s406_s15, 4  ;;  %s949_s14 = int_to_ptr.hbm [resolvable:$true] %s1748_s14  ;;  %s960_s17 = int_to_ptr.vmem [resolvable:$true] %s1751_s17 }
  0x3a   : > { %v438_v8 = vsel %vm430_vm0, %v437_v5, 0.0  ;;  %1107 = vmatmul.msk.f32.vlgmr.msra.gmra.mxu1 %vm430_vm0, %v420_v1  ;;  %s1753_s13 = sshll.u32 %s957_s22, 4  ;;  %s932_s4 = scalar_lea.sflag [#allocation4], %s1547_s28  ;;  %s962_s13 = int_to_ptr.hbm [resolvable:$true] %s1753_s13 }
  0x3b   : > { %1103 = vmatmul.msk.f32.vlgmr.msra.gmra.mxu0 %vm430_vm0, %v418_v3  ;;  %1104 = vmatmul.msk.f32.vlgmr.msra.gmra.mxu2 %vm430_vm0, %v419_v2  ;;  %s1304_s21 = sshra.s32 %s949_s14, 4  ;;  %s1310_s18 = scalar_lea.hbm %s1815_s8, 2  ;;  %s1305_s21 = int_to_ptr.hbm [resolvable:$true] %s1304_s21 }
  0x3c   : > { %439 = vadd.xlane.f32.xlu1 %v438_v8  ;;  %590 = vperm.xlu2 %1203, %v425_v10   ;;  %v1400_v8 = vmov 5   ;;  %v1401_v10 = vmov 4   ;;  %s1306_s29 = scalar_lea.hbm %s1305_s21, 1  ;;  %p1311_p10 = scmp.lt.s32.totalorder %s1305_s21, %s1815_s8 }
  0x3d   : > { %p1307_p1 = scmp.ne.s32.totalorder %s1305_s21, %s1306_s29  ;;  %p1312_p2 = scmp.lt.s32.totalorder %s1310_s18, %s1306_s29 }
  0x3e   : > { %435 = vadd.xlane.f32.xlu0 %v434_v11  ;;  %v1402_v11 = vmov 6  }
  0x3f   : > { %p1308_p4 = pnand %p1307_p1, %p1521_p7  ;;  %p1313_p11 = por %p1312_p2, %p1311_p10 }
  0x41   : > { %p1309_p9 = pneg %p1308_p4 }
  0x43   : > { %p1314_p12 = pnand %p1313_p11, %p1309_p9 }
  0x44   : > { %1205 = vset.pattern.permute.xlu2 %v1396_v22 }
  0x55   : > { %577 = vperm.xlu1 %1202, %v423_v12   ;;  %v1403_v12 = vmov 7  }
  0x5d   : > { %1206 = vset.pattern.permute.xlu1 %v1397_v23 }
  0x8e   : > { %v581_v3 = vpop.permute.xlu2 %580 }
  0x8f   : > { %vm584_vm11 = vcmp.eq.s32.totalorder %v581_v3, %v1222_v46 }
  0x90   : > { %vm588_vm12 = vmand %vm584_vm11, %vm586_vm10 }
  0xa9   : > { %v433_v13 = vpop.xlane.xlu0 %432 }
  0xaa   : > { %v496_v15 = vadd.f32 %v1220_v14, %v433_v13  ;;  %v1221_v13 = vld [vmem:[%s1809_s2] ss:$0 sm:$0xff] }
  0xaf   : > { %v1605_v37 = vpop.xlane.xlu1 %439 }
  0xb1   : > { %v436_v18 = vpop.xlane.xlu0 %435 }
  0xb2   : > { %v497_v21 = vadd.f32 %v1220_v14, %v436_v18 }
  0xb7   : > { %v490_v14 = vpop.f32.mrf.mxu1 }
  0xb8   : > { %v467_v16 = vpop.f32.mrf.mxu0 }
  0xb9   : > { %v498_v17 = vmul.f32 2.0, %v467_v16  ;;  %v508_v16 = vmul.f32 2.0, %v490_v14 }
  0xbb   : > { %v500_v19 = vsub.f32 %v496_v15, %v498_v17  ;;  %v507_v15 = vadd.f32 %v1221_v13, %v1605_v37 }
  0xbd   : > { %v502_v20 = vmax.f32 %v500_v19, 0.0  ;;  %v509_v17 = vsub.f32 %v507_v15, %v508_v16 }
  0xbe   : > { %v470_v24 = vpop.f32.mrf.mxu2 }
  0xbf   : > { %vm511_vm1 = vcmp.eq.f32.partialorder %v502_v20, 0.0  ;;  %v499_v25 = vmul.f32 2.0, %v470_v24 }
  0xc0   : > { %v1108_v27 = vsel %vm511_vm1, 1.0, %v1398_v26 }
  0xc1   : > { %v517_v28 = vmul.f32 1e-16, %v1108_v27  ;;  %v501_v29 = vsub.f32 %v497_v21, %v499_v25  ;;  %v545_v55 = vsub.f32 1.0, %v1108_v27  ;;  %v591_v25 = vpop.permute.xlu2 %590 }
  0xc2   : > { %vm593_vm0 = vcmp.ne.s32.totalorder %v591_v25, %v1223_v35 }
  0xc3   : > { %v519_v30 = vadd.f32 %v517_v28, %v502_v20  ;;  %v503_v31 = vmax.f32 %v501_v29, 0.0 }
  0xc5   : > { %1224 = vrsqrt.f32 %v519_v30  ;;  %vm512_vm2 = vcmp.eq.f32.partialorder %v503_v31, 0.0  ;;  %vm528_vm5 = vcmp.eq.f32.partialorder %v519_v30, inf  ;;  %v531_v54 = vand.u32 2147483648, %v519_v30 }
  0xc6   : > { %v1109_v32 = vsel %vm512_vm2, 1.0, %v1398_v26  ;;  %vm530_vm6 = vcmp.eq.f32.partialorder %v519_v30, 0.0  ;;  %vm614_vm2 = vcmask 130048  }
  0xc7   : > { %v518_v33 = vmul.f32 1e-16, %v1109_v32  ;;  %v578_v49 = vpop.permute.xlu1 %577  ;;  %v546_v5 = vsub.f32 1.0, %v1109_v32 }
  0xc8   : > { %vm583_vm4 = vcmp.eq.s32.totalorder %v578_v49, %v1222_v46 }
  0xc9   : > { %v520_v34 = vadd.f32 %v518_v33, %v503_v31  ;;  %vm587_vm7 = vmand %vm583_vm4, %vm585_vm3 }
  0xcb   : > { %v1225_v36 = vpop.eup %1224  ;;  %1226 = vrsqrt.f32 %v520_v34  ;;  %vm540_vm8 = vcmp.eq.f32.partialorder %v520_v34, inf  ;;  %v543_v61 = vand.u32 2147483648, %v520_v34  ;;  %vm542_vm9 = vcmp.eq.f32.partialorder %v520_v34, 0.0 }
  0xcc   : > { %v522_v38 = vmul.f32 %v1225_v36, %v519_v30 }
  0xce   : > { %v523_v40 = vmul.f32 %v1225_v36, %v522_v38 }
  0xd0   : > { %v524_v42 = vmul.f32 0.5, %v523_v40 }
  0xd1   : > { %v1227_v43 = vpop.eup %1226 }
  0xd2   : > { %v534_v47 = vmul.f32 %v1227_v43, %v520_v34  ;;  %v525_v48 = vsub.f32 1.5, %v524_v42 }
  0xd4   : > { %v535_v50 = vmul.f32 %v1227_v43, %v534_v47  ;;  %v526_v51 = vmul.f32 %v1225_v36, %v525_v48 }
  0xd6   : > { %v536_v52 = vmul.f32 0.5, %v535_v50  ;;  %v527_v53 = vmul.f32 %v526_v51, %v519_v30 }
  0xd8   : > { %v537_v56 = vsub.f32 1.5, %v536_v52  ;;  %v529_v57 = vsel %vm528_vm5, %v519_v30, %v527_v53 }
  0xd9   : > { %v532_v58 = vsel %vm530_vm6, %v531_v54, %v529_v57 }
  0xda   : > { %v538_v59 = vmul.f32 %v1227_v43, %v537_v56  ;;  %v547_v60 = vmul.f32 %v545_v55, %v532_v58 }
  0xdc   : > { %v539_v63 = vmul.f32 %v538_v59, %v520_v34  ;;  %v594_v1 = vsel %vm587_vm7, %v547_v60, -1e+30 }
  0xdd   : > { %683 = vperm.xlu1 %1206, %v594_v1   ;;  %642 = vperm.xlu2 %1205, %v594_v1  }
  0xde   : > { %v541_v2 = vsel %vm540_vm8, %v520_v34, %v539_v63  ;;  %599 = vperm.xlu0 %1204, %v594_v1  }
  0xdf   : > { %v544_v4 = vsel %vm542_vm9, %v543_v61, %v541_v2 }
  0xe0   : > { %v548_v6 = vmul.f32 %v546_v5, %v544_v4 }
  0xe2   : > { %v595_v9 = vsel %vm588_vm12, %v548_v6, -1e+30 }
  0xe5   : > { %1207 = vset.pattern.permute.xlu1 %v1399_v7  ;;  %1209 = vset.pattern.permute.xlu2 %v1400_v8 }
  0xe6   : > { %1215 = vset.pattern.permute.xlu0 %v1401_v10  ;;  %724 = vperm.xlu1 %1207, %v594_v1  }
  0xe7   : > { %806 = vperm.xlu2 %1209, %v594_v1   ;;  %769 = vperm.xlu0 %1215, %v595_v9  }
  0xee   : > { %1208 = vset.pattern.permute.xlu1 %v1401_v10 }
  0xef   : > { %1210 = vset.pattern.permute.xlu2 %v1402_v11  ;;  %1218 = vset.pattern.permute.xlu0 %v1403_v12 }
  0xf0   : > { %765 = vperm.xlu1 %1208, %v594_v1   ;;  %847 = vperm.xlu2 %1210, %v594_v1  }
  0xf1   : > { %888 = vperm.xlu0 %1218, %v594_v1  }
  0xf8   : > { %1216 = vset.pattern.permute.xlu1 %v1400_v8  ;;  %1211 = vset.pattern.permute.xlu2 %v1395_v0  ;;  %v510_v0 = vmax.f32 %v509_v17, 0.0 }
  0xf9   : > { %810 = vperm.xlu1 %1216, %v595_v9   ;;  %604 = vperm.xlu2 %1211, %v595_v9  }
  0xfa   : > { %vm549_vm13 = vcmp.eq.f32.partialorder %v510_v0, 0.0 }
  0xfb   : > { %v1110_v18 = vsel %vm549_vm13, 1.0, %v1398_v26 }
  0xfc   : > { %v552_v19 = vmul.f32 1e-16, %v1110_v18  ;;  %v566_v36 = vsub.f32 1.0, %v1110_v18 }
  0xfe   : > { %v553_v20 = vadd.f32 %v552_v19, %v510_v0 }
 0x100   : > { %1228 = vrsqrt.f32 %v553_v20  ;;  %vm561_vm14 = vcmp.eq.f32.partialorder %v553_v20, inf  ;;  %v564_v32 = vand.u32 2147483648, %v553_v20  ;;  %vm563_vm15 = vcmp.eq.f32.partialorder %v553_v20, 0.0 }
 0x101   : > { %1217 = vset.pattern.permute.xlu1 %v1402_v11  ;;  %1212 = vset.pattern.permute.xlu2 %v1396_v22 }
 0x102   : > { %851 = vperm.xlu1 %1217, %v595_v9   ;;  %646 = vperm.xlu2 %1212, %v595_v9  }
 0x106   : > { %v1229_v21 = vpop.eup %1228 }
 0x107   : > { %v555_v22 = vmul.f32 %v1229_v21, %v553_v20 }
 0x109   : > { %v556_v24 = vmul.f32 %v1229_v21, %v555_v22 }
 0x10a   : > { %1213 = vset.pattern.permute.xlu2 %v1397_v23 }
 0x10b   : > { %687 = vperm.xlu2 %1213, %v595_v9   ;;  %v557_v27 = vmul.f32 0.5, %v556_v24 }
 0x10d   : > { %v558_v28 = vsub.f32 1.5, %v557_v27 }
 0x10f   : > { %v559_v23 = vmul.f32 %v1229_v21, %v558_v28 }
 0x111   : > { %v560_v30 = vmul.f32 %v559_v23, %v553_v20 }
 0x113   : > { %1214 = vset.pattern.permute.xlu2 %v1399_v7  ;;  %v562_v31 = vsel %vm561_vm14, %v553_v20, %v560_v30 }
 0x114   : > { %728 = vperm.xlu2 %1214, %v595_v9   ;;  %v565_v34 = vsel %vm563_vm15, %v564_v32, %v562_v31 }
 0x115   : > { %v567_v37 = vmul.f32 %v566_v36, %v565_v34 }
 0x117   : > { %v1621_v38 = vsel %vm593_vm0, %v567_v37, 1e+30 }
 0x118   : > { %v649_v40 = vperm.slane %v1621_v38, 1  ;;  %v813_v41 = vperm.slane %v1621_v38, 5  ;;  %v854_v43 = vperm.slane %v1621_v38, 6  ;;  %v607_v45 = vperm.slane %v1621_v38, 0 }
 0x119   : > { %v690_v56 = vperm.slane %v1621_v38, 2  ;;  %v731_v61 = vperm.slane %v1621_v38, 3  ;;  %v772_v2 = vperm.slane %v1621_v38, 4  ;;  %v895_v24 = vperm.slane %v1621_v38, 7 }
 0x11c   : > { %1219 = vset.pattern.permute.xlu2 %v1403_v12 }
 0x11d   : > { %892 = vperm.xlu2 %1219, %v595_v9  }
 0x137   : > { %v643_v29 = vpop.permute.xlu2 %642 }
 0x138   : > { %v650_v42 = vsub.f32 %v643_v29, %v649_v40 }
 0x13a   : > { %v652_v50 = vadd.f32 1.0, %v650_v42 }
 0x13c   : > { %v654_v59 = vmax.f32 %v652_v50, 0.0 }
 0x13e   : > { %vm666_vm4 = vcmp.gt.f32.partialorder %v654_v59, 1e-16  ;;  %v656_v23 = vsel %vm614_vm2, %v654_v59, 0.0 }
 0x13f   : > { %v1114_v19 = vsel %vm666_vm4, 1.0, %v1398_v26 }
 0x140   : > { %v672_v30 = vsel %vm614_vm2, %v1114_v19, 0.0 }
 0x141   : > { %v807_v33 = vpop.permute.xlu2 %806 }
 0x142   : > { %v814_v46 = vsub.f32 %v807_v33, %v813_v41 }
 0x144   : > { %v816_v53 = vadd.f32 1.0, %v814_v46 }
 0x146   : > { %v818_v62 = vmax.f32 %v816_v53, 0.0 }
 0x148   : > { %vm830_vm5 = vcmp.gt.f32.partialorder %v818_v62, 1e-16  ;;  %v1653_v31 = vsel %vm614_vm2, %v818_v62, 0.0 }
 0x149   : > { %v1122_v21 = vsel %vm830_vm5, 1.0, %v1398_v26 }
 0x14a   : > { %v848_v39 = vpop.permute.xlu2 %847  ;;  %v1657_v33 = vsel %vm614_vm2, %v1122_v21, 0.0 }
 0x14b   : > { %v855_v48 = vsub.f32 %v848_v39, %v854_v43 }
 0x14d   : > { %v857_v55 = vadd.f32 1.0, %v855_v48 }
 0x14f   : > { %v684_v44 = vpop.permute.xlu1 %683  ;;  %v859_v3 = vmax.f32 %v857_v55, 0.0 }
 0x150   : > { %v600_v47 = vpop.permute.xlu0 %599  ;;  %v691_v60 = vsub.f32 %v684_v44, %v690_v56 }
 0x151   : > { %v608_v49 = vsub.f32 %v600_v47, %v607_v45  ;;  %vm871_vm6 = vcmp.gt.f32.partialorder %v859_v3, 1e-16  ;;  %v1660_v34 = vsel %vm614_vm2, %v859_v3, 0.0 }
 0x152   : > { %v693_v10 = vadd.f32 1.0, %v691_v60  ;;  %v1124_v25 = vsel %vm871_vm6, 1.0, %v1398_v26 }
 0x153   : > { %v610_v51 = vadd.f32 1.0, %v608_v49  ;;  %v605_v52 = vpop.permute.xlu2 %604  ;;  %v1663_v39 = vsel %vm614_vm2, %v1124_v25, 0.0 }
 0x154   : > { %v609_v54 = vsub.f32 %v605_v52, %v607_v45  ;;  %v695_v22 = vmax.f32 %v693_v10, 0.0 }
 0x155   : > { %v612_v57 = vmax.f32 %v610_v51, 0.0 }
 0x156   : > { %v611_v58 = vadd.f32 1.0, %v609_v54  ;;  %vm1666_vm7 = vcmp.gt.f32.partialorder %v695_v22, 1e-16 }
 0x157   : > { %vm625_vm1 = vcmp.gt.f32.partialorder %v612_v57, 1e-16  ;;  %v615_v7 = vsel %vm614_vm2, %v612_v57, 0.0  ;;  %v1116_v57 = vsel %vm1666_vm7, 1.0, %v1398_v26 }
 0x158   : > { %v613_v63 = vmax.f32 %v611_v58, 0.0  ;;  %v725_v1 = vpop.permute.xlu1 %724  ;;  %v1112_v4 = vsel %vm625_vm1, 1.0, %v1398_v26  ;;  %v713_v21 = vsel %vm614_vm2, %v1116_v57, 0.0 }
 0x159   : > { %v732_v5 = vsub.f32 %v725_v1, %v731_v61  ;;  %v770_v6 = vpop.permute.xlu0 %769  ;;  %v631_v13 = vsel %vm614_vm2, %v1112_v4, 0.0 }
 0x15a   : > { %v616_v8 = vsel %vm614_vm2, %v613_v63, 0.0  ;;  %vm626_vm3 = vcmp.gt.f32.partialorder %v613_v63, 1e-16  ;;  %v774_v9 = vsub.f32 %v770_v6, %v772_v2 }
 0x15b   : > { %v617_v11 = vadd.f32 %v616_v8, %v615_v7  ;;  %v1113_v12 = vsel %vm626_vm3, 1.0, %v1398_v26  ;;  %v1644_v0 = vadd.f32 1.0, %v732_v5 }
 0x15c   : > { %v632_v14 = vsel %vm614_vm2, %v1113_v12, 0.0  ;;  %v776_v15 = vadd.f32 1.0, %v774_v9  ;;  %v647_v16 = vpop.permute.xlu2 %646 }
 0x15d   : > { %v633_v17 = vadd.f32 %v632_v14, %v631_v13  ;;  %v651_v18 = vsub.f32 %v647_v16, %v649_v40  ;;  %v618_v20 = vrot.slane %v617_v11, 4  ;;  %v736_v32 = vmax.f32 %v1644_v0, 0.0 }
 0x15e   : > { %v778_v28 = vmax.f32 %v776_v15, 0.0  ;;  %v697_v40 = vsel %vm614_vm2, %v695_v22, 0.0 }
 0x15f   : > { %v634_v27 = vrot.slane %v633_v17, 4  ;;  %v653_v29 = vadd.f32 1.0, %v651_v18  ;;  %v619_v35 = vadd.f32 %v618_v20, %v617_v11  ;;  %vm748_vm10 = vcmp.gt.f32.partialorder %v736_v32, 1e-16 }
 0x160   : > { %vm790_vm8 = vcmp.gt.f32.partialorder %v778_v28, 1e-16  ;;  %v1118_v63 = vsel %vm748_vm10, 1.0, %v1398_v26  ;;  %v780_v3 = vsel %vm614_vm2, %v778_v28, 0.0 }
 0x161   : > { %v655_v36 = vmax.f32 %v653_v29, 0.0  ;;  %v635_v46 = vadd.f32 %v634_v27, %v633_v17  ;;  %v620_v52 = vrot.slane %v619_v35, 2  ;;  %v1121_v58 = vsel %vm790_vm8, 1.0, %v1398_v26 }
 0x162   : > { %v766_v37 = vpop.permute.xlu1 %765  ;;  %v738_v29 = vsel %vm614_vm2, %v736_v32, 0.0 }
 0x163   : > { %v773_v44 = vsub.f32 %v766_v37, %v772_v2  ;;  %v889_v45 = vpop.permute.xlu0 %888  ;;  %v657_v47 = vsel %vm614_vm2, %v655_v36, 0.0  ;;  %vm667_vm9 = vcmp.gt.f32.partialorder %v655_v36, 1e-16  ;;  %v636_v62 = vrot.slane %v635_v46, 2 }
 0x164   : > { %v658_v48 = vadd.f32 %v657_v47, %v656_v23  ;;  %v1115_v49 = vsel %vm667_vm9, 1.0, %v1398_v26  ;;  %v896_v50 = vsub.f32 %v889_v45, %v895_v24  ;;  %v621_v7 = vadd.f32 %v620_v52, %v619_v35 }
 0x165   : > { %v688_v51 = vpop.permute.xlu2 %687  ;;  %v673_v53 = vsel %vm614_vm2, %v1115_v49, 0.0  ;;  %v775_v54 = vadd.f32 1.0, %v773_v44  ;;  %v637_v14 = vadd.f32 %v636_v62, %v635_v46  ;;  %v1693_v35 = vsel %vm614_vm2, %v1118_v63, 0.0 }
 0x166   : > { %v692_v55 = vsub.f32 %v688_v51, %v690_v56  ;;  %v659_v59 = vrot.slane %v658_v48, 4  ;;  %v674_v60 = vadd.f32 %v673_v53, %v672_v30  ;;  %v898_v6 = vadd.f32 1.0, %v896_v50 }
 0x167   : > { %v777_v1 = vmax.f32 %v775_v54, 0.0  ;;  %v796_v56 = vsel %vm614_vm2, %v1121_v58, 0.0  ;;  %v622_v28 = vrot.slane %v621_v7, 1  ;;  %v638_v42 = vrot.slane %v637_v14, 1 }
 0x168   : > { %v694_v2 = vadd.f32 1.0, %v692_v55  ;;  %v660_v4 = vadd.f32 %v659_v59, %v658_v48  ;;  %v675_v5 = vrot.slane %v674_v60, 4  ;;  %v900_v20 = vmax.f32 %v898_v6, 0.0 }
 0x169   : > { %v779_v8 = vsel %vm614_vm2, %v777_v1, 0.0  ;;  %vm789_vm11 = vcmp.gt.f32.partialorder %v777_v1, 1e-16  ;;  %v623_v49 = vadd.f32 %v622_v28, %v621_v7  ;;  %v639_v58 = vadd.f32 %v638_v42, %v637_v14 }
 0x16a   : > { %v661_v9 = vrot.slane %v660_v4, 2  ;;  %v676_v10 = vadd.f32 %v675_v5, %v674_v60  ;;  %v781_v11 = vadd.f32 %v780_v3, %v779_v8  ;;  %v1120_v12 = vsel %vm789_vm11, 1.0, %v1398_v26 }
 0x16b   : > { %v811_v13 = vpop.permute.xlu1 %810  ;;  %v795_v15 = vsel %vm614_vm2, %v1120_v12, 0.0  ;;  %v696_v16 = vmax.f32 %v694_v2, 0.0  ;;  %vm1696_vm13 = vcmp.gt.f32.partialorder %v900_v20, 1e-16 }
 0x16c   : > { %v815_v17 = vsub.f32 %v811_v13, %v813_v41  ;;  %v677_v0 = vrot.slane %v676_v10, 2  ;;  %v782_v18 = vrot.slane %v781_v11, 4  ;;  %v797_v19 = vadd.f32 %v796_v56, %v795_v15 }
 0x16d   : > { %v698_v22 = vsel %vm614_vm2, %v696_v16, 0.0  ;;  %vm708_vm12 = vcmp.gt.f32.partialorder %v696_v16, 1e-16  ;;  %v662_v23 = vadd.f32 %v661_v9, %v660_v4  ;;  %v1126_v60 = vsel %vm1696_vm13, 1.0, %v1398_v26 }
 0x16e   : > { %v817_v25 = vadd.f32 1.0, %v815_v17  ;;  %v729_v27 = vpop.permute.xlu2 %728  ;;  %v798_v30 = vrot.slane %v797_v19, 4  ;;  %v699_v41 = vadd.f32 %v698_v22, %v697_v40  ;;  %v1117_v36 = vsel %vm708_vm12, 1.0, %v1398_v26 }
 0x16f   : > { %v678_v44 = vadd.f32 %v677_v0, %v676_v10  ;;  %v783_v45 = vadd.f32 %v782_v18, %v781_v11  ;;  %v714_v48 = vsel %vm614_vm2, %v1117_v36, 0.0  ;;  %v663_v50 = vrot.slane %v662_v23, 1 }
 0x170   : > { %v819_v37 = vmax.f32 %v817_v25, 0.0  ;;  %v700_v47 = vrot.slane %v699_v41, 4  ;;  %v799_v51 = vadd.f32 %v798_v30, %v797_v19  ;;  %v733_v40 = vsub.f32 %v729_v27, %v731_v61 }
 0x171   : > { %v715_v53 = vadd.f32 %v714_v48, %v713_v21  ;;  %v679_v59 = vrot.slane %v678_v44, 1  ;;  %v784_v63 = vrot.slane %v783_v45, 2  ;;  %v664_v3 = vadd.f32 %v663_v50, %v662_v23 }
 0x172   : > { %v821_v32 = vsel %vm614_vm2, %v819_v37, 0.0  ;;  %vm831_vm14 = vcmp.gt.f32.partialorder %v819_v37, 1e-16  ;;  %v701_v52 = vadd.f32 %v700_v47, %v699_v41  ;;  %v902_v4 = vsel %vm614_vm2, %v900_v20, 0.0 }
 0x173   : > { %v822_v54 = vadd.f32 %v821_v32, %v1653_v31  ;;  %v1123_v55 = vsel %vm831_vm14, 1.0, %v1398_v26  ;;  %v716_v2 = vrot.slane %v715_v53, 4  ;;  %v735_v31 = vadd.f32 1.0, %v733_v40 }
 0x174   : > { %v852_v57 = vpop.permute.xlu1 %851  ;;  %v837_v62 = vsel %vm614_vm2, %v1123_v55, 0.0  ;;  %v702_v1 = vrot.slane %v701_v52, 2  ;;  %v800_v7 = vrot.slane %v799_v51, 2  ;;  %v918_v10 = vsel %vm614_vm2, %v1126_v60, 0.0 }
 0x175   : > { %v838_v61 = vadd.f32 %v837_v62, %v1657_v33  ;;  %v856_v5 = vsub.f32 %v852_v57, %v854_v43  ;;  %v717_v8 = vadd.f32 %v716_v2, %v715_v53  ;;  %v823_v9 = vrot.slane %v822_v54, 4 }
 0x176   : > { %v703_v56 = vadd.f32 %v702_v1, %v701_v52  ;;  %v737_v11 = vmax.f32 %v735_v31, 0.0  ;;  %v680_v33 = vadd.f32 %v679_v59, %v678_v44  ;;  %v1717_v14 = vadd.f32 %v784_v63, %v783_v45 }
 0x177   : > { %v893_v6 = vpop.permute.xlu2 %892  ;;  %v858_v12 = vadd.f32 1.0, %v856_v5  ;;  %v718_v15 = vrot.slane %v717_v8, 2  ;;  %v839_v16 = vrot.slane %v838_v61, 4  ;;  %v665_v17 = vadd.f32 %v664_v3, %v623_v49 }
 0x178   : > { %v897_v13 = vsub.f32 %v893_v6, %v895_v24  ;;  %v739_v43 = vsel %vm614_vm2, %v737_v11, 0.0  ;;  %vm749_vm15 = vcmp.gt.f32.partialorder %v737_v11, 1e-16  ;;  %v1720_v18 = vadd.f32 %v800_v7, %v799_v51 }
 0x179   : > { %v860_v0 = vmax.f32 %v858_v12, 0.0  ;;  %v704_v19 = vrot.slane %v703_v56, 1  ;;  %v824_v20 = vadd.f32 %v823_v9, %v822_v54  ;;  %v740_v22 = vadd.f32 %v739_v43, %v738_v29 }
 0x17a   : > { %v899_v21 = vadd.f32 1.0, %v897_v13  ;;  %v1119_v25 = vsel %vm749_vm15, 1.0, %v1398_v26  ;;  %v681_v24 = vadd.f32 %v680_v33, %v639_v58  ;;  %v786_v27 = vrot.slane %v1717_v14, 1 }
 0x17b   : > { %v862_v38 = vsel %vm614_vm2, %v860_v0, 0.0  ;;  %vm872_vm0 = vcmp.gt.f32.partialorder %v860_v0, 1e-16  ;;  %v719_v28 = vadd.f32 %v718_v15, %v717_v8  ;;  %v840_v23 = vadd.f32 %v839_v16, %v838_v61 }
 0x17c   : > { %v741_v30 = vrot.slane %v740_v22, 4  ;;  %v755_v41 = vsel %vm614_vm2, %v1119_v25, 0.0  ;;  %v863_v36 = vadd.f32 %v862_v38, %v1660_v34  ;;  %v1125_v37 = vsel %vm872_vm0, 1.0, %v1398_v26 }
 0x17d   : > { %v802_v42 = vrot.slane %v1720_v18, 1  ;;  %v705_v29 = vadd.f32 %v704_v19, %v703_v56  ;;  %v825_v44 = vrot.slane %v824_v20, 2  ;;  %v756_v45 = vadd.f32 %v755_v41, %v1693_v35 }
 0x17e   : > { %v742_v46 = vadd.f32 %v741_v30, %v740_v22  ;;  %v864_v47 = vrot.slane %v863_v36, 4  ;;  %v878_v48 = vsel %vm614_vm2, %v1125_v37, 0.0  ;;  %v901_v32 = vmax.f32 %v899_v21, 0.0 }
 0x17f   : > { %v720_v49 = vrot.slane %v719_v28, 1  ;;  %v841_v50 = vrot.slane %v840_v23, 2  ;;  %v757_v51 = vrot.slane %v756_v45, 4  ;;  %v879_v40 = vadd.f32 %v878_v48, %v1663_v39 }
 0x180   : > { %v743_v52 = vrot.slane %v742_v46, 2  ;;  %v865_v34 = vadd.f32 %v864_v47, %v863_v36  ;;  %v903_v53 = vsel %vm614_vm2, %v901_v32, 0.0  ;;  %vm913_vm1 = vcmp.gt.f32.partialorder %v901_v32, 1e-16 }
 0x181   : > { %v758_v54 = vadd.f32 %v757_v51, %v756_v45  ;;  %v880_v55 = vrot.slane %v879_v40, 4  ;;  %v904_v57 = vadd.f32 %v903_v53, %v902_v4  ;;  %v1127_v35 = vsel %vm913_vm1, 1.0, %v1398_v26 }
 0x182   : > { %v826_v58 = vadd.f32 %v825_v44, %v824_v20  ;;  %v744_v59 = vadd.f32 %v743_v52, %v742_v46  ;;  %v866_v60 = vrot.slane %v865_v34, 2  ;;  %v919_v62 = vsel %vm614_vm2, %v1127_v35, 0.0 }
 0x183   : > { %v759_v63 = vrot.slane %v758_v54, 2  ;;  %v881_v1 = vadd.f32 %v880_v55, %v879_v40  ;;  %v905_v2 = vrot.slane %v904_v57, 4  ;;  %v920_v61 = vadd.f32 %v919_v62, %v918_v10 }
 0x184   : > { %v721_v39 = vadd.f32 %v720_v49, %v719_v28  ;;  %v842_v3 = vadd.f32 %v841_v50, %v840_v23  ;;  %v745_v31 = vrot.slane %v744_v59, 1  ;;  %v867_v5 = vadd.f32 %v866_v60, %v865_v34 }
 0x185   : > { %v760_v6 = vadd.f32 %v759_v63, %v758_v54  ;;  %v882_v7 = vrot.slane %v881_v1, 2  ;;  %v906_v56 = vadd.f32 %v905_v2, %v904_v57  ;;  %v921_v8 = vrot.slane %v920_v61, 4 }
 0x186   : > { %v706_v4 = vadd.f32 %v705_v29, %v665_v17  ;;  %v827_v9 = vrot.slane %v826_v58, 1  ;;  %v746_v26 = vadd.f32 %v745_v31, %v744_v59  ;;  %v868_v11 = vrot.slane %v867_v5, 1 }
 0x187   : > { %v761_v12 = vrot.slane %v760_v6, 1  ;;  %v883_v13 = vadd.f32 %v882_v7, %v881_v1  ;;  %v907_v33 = vrot.slane %v906_v56, 2  ;;  %v922_v15 = vadd.f32 %v921_v8, %v920_v61 }
 0x188   : > { %v787_v16 = vadd.f32 %v786_v27, %v1717_v14  ;;  %v722_v10 = vadd.f32 %v721_v39, %v681_v24  ;;  %v843_v43 = vrot.slane %v842_v3, 1  ;;  %v747_v0 = vadd.f32 %v746_v26, %v706_v4 }
 0x189   : > { %v762_v19 = vadd.f32 %v761_v12, %v760_v6  ;;  %v884_v20 = vrot.slane %v883_v13, 1  ;;  %v908_v21 = vadd.f32 %v907_v33, %v906_v56  ;;  %v923_v22 = vrot.slane %v922_v15, 2 }
 0x18a   : > { %v828_v17 = vadd.f32 %v827_v9, %v826_v58  ;;  %v788_v25 = vadd.f32 %v787_v16, %v747_v0  ;;  %v869_v38 = vadd.f32 %v868_v11, %v867_v5  ;;  %v803_v28 = vadd.f32 %v802_v42, %v1720_v18 }
 0x18b   : > { %v763_v23 = vadd.f32 %v762_v19, %v722_v10  ;;  %v909_v14 = vrot.slane %v908_v21, 1  ;;  %v924_v24 = vadd.f32 %v923_v22, %v922_v15  ;;  %v844_v27 = vadd.f32 %v843_v43, %v842_v3 }
 0x18c   : > { %v829_v30 = vadd.f32 %v828_v17, %v788_v25  ;;  %v885_v36 = vadd.f32 %v884_v20, %v883_v13  ;;  %vm928_vm2 = vcmask 122880  }
 0x18d   : > { %v804_v41 = vadd.f32 %v803_v28, %v763_v23  ;;  %v910_v37 = vadd.f32 %v909_v14, %v908_v21  ;;  %v925_v29 = vrot.slane %v924_v24, 1 }
 0x18e   : > { %v870_v18 = vadd.f32 %v869_v38, %v829_v30 }
 0x18f   : > { %v845_v42 = vadd.f32 %v844_v27, %v804_v41  ;;  %v926_v44 = vadd.f32 %v925_v29, %v924_v24 }
 0x190   : > { %v911_v45 = vadd.f32 %v910_v37, %v870_v18 }
 0x191   : > { %v886_v46 = vadd.f32 %v885_v36, %v845_v42 }
 0x192   : > { %929 = vst.msk [vmem:[%s400_s24] sm:$0x1] %vm928_vm2, %v911_v45 }
 0x193   : > { %1317 = shalt.err (!%p1314_p12)
}
 0x194   : > { %1137 = dma.vmem_to_hbm [thread:$0]  (%p1521_p7), %s947_s25, 16, %s949_s14, %s932_s4   ;;  %v927_v47 = vadd.f32 %v926_v44, %v886_v46 }
 0x195   : > { %s936_s24 = scalar_lea.sflag [#allocation9], %s1547_s28  ;;  %s1332_s20 = sshra.s32 %s962_s13, 4  ;;  %s1333_s20 = int_to_ptr.hbm [resolvable:$true] %s1332_s20 }
 0x196   : > { %930 = vst.msk [vmem:[%s406_s15] sm:$0x1] %vm928_vm2, %v927_v47  ;;  %s1334_s26 = scalar_lea.hbm %s1333_s20, 1  ;;  %s1338_s18 = scalar_lea.hbm %s1816_s9, 2 }
 0x197   : > { %p1335_p13 = scmp.ne.s32.totalorder %s1333_s20, %s1334_s26  ;;  %p1339_p5 = scmp.lt.s32.totalorder %s1333_s20, %s1816_s9 }
 0x198   : > { %p1340_p8 = scmp.lt.s32.totalorder %s1338_s18, %s1334_s26 }
 0x199   : > { %p1336_p0 = pnand %p1335_p13, %p1521_p7 }
 0x19a   : > { %p1341_p1 = por %p1340_p8, %p1339_p5 }
 0x19b   : > { %p1337_p3 = pneg %p1336_p0 }
 0x19d   : > { %p1342_p4 = pnand %p1341_p1, %p1337_p3 }
 0x19f   : > { %1345 = shalt.err (!%p1342_p4)
}
 0x1a0   : > { %1138 = dma.vmem_to_hbm [thread:$0]  (%p1521_p7), %s960_s17, 16, %s962_s13, %s936_s24  }
 0x1a1 PF: > { %s973_s28 = sand.u32 1, %s1380_s30   ;;  %p1829_p9 = scmp.ge.s32.totalorder %s1392_s12, 2 }
 0x1a2   : > { %s974_s25 = scalar_lea.sflag [#allocation4], %s973_s28 }
 0x1a3   : > { %p1150_p10 = pnand %p1829_p9, %p1489_p6 }
 0x1a5   : > { %p1151_p2 = pneg %p1150_p10 }
 0x1a7   : > { %1371 = dma.done.wait (%p1151_p2), %s974_s25, 16  }
 0x1a8   : > { %1373 = vsyncadd (%p1151_p2), %s974_s25, 4294967280  ;;  %s983_s14 = scalar_lea.sflag [#allocation9], %s973_s28 }
 0x1a9   : > { %1375 = dma.done.wait (%p1151_p2), %s983_s14, 16  }
 0x1aa   : > { %1377 = vsyncadd (%p1151_p2), %s983_s14, 4294967280  ;;  %s1830_s27 = sld [smem:[#allocation14_spill]]  ;;  %p27_p7 = scmp.ge.s32.totalorder %s1507_s23, 4  }
 0x1ab   : > { %s1831_s30 = smov %s1384_s10  ;;  %s1832_s10 = smov %s1388_s11 }
 0x1ac   : > { %s1834_s12 = smov %s1507_s23  ;;  %29 = sbr.rel (!%p27_p7) target bundleno = 10 (0xa), region = 127 }
 0x1b0   : > { %s1833_s11 = smov %s1830_s27 }
 0x1b1   :  { %988 = vsyncpa [#allocation3], 1 }
 0x1b2   :  { %990 = vsyncpa [#allocation3 + $0x1], 1 }
 0x1b3   :  { %991 = vsyncpa [#allocation6], 1 }
 0x1b4   :  { %992 = vsyncpa [#allocation4], 1 }
 0x1b5   :  { %994 = vsyncpa [#allocation4 + $0x1], 1 }
 0x1b6   :  { %995 = vsyncpa [#allocation9], 1 }
 0x1b7   :  { %997 = vsyncpa [#allocation9 + $0x1], 1 }

</bundles_post_ra>
